<compile_context>
chip_gen: v6e
topology: v6e:2x2x1
jax: 0.10.0
libtpu: 0.0.40
codegen_flags: <defaults>
</compile_context>

<pallas_src>
import math

import jax
import jax.numpy as jnp
from jax.experimental import pallas as pl
from jax.experimental.pallas import tpu as pltpu


def _logreg_kernel(b_ref, x_ref, w_ref, o_ref):
    # b_ref: (1,) SMEM scalar bias (resident)
    # x_ref: (tile_rows, d_eff) VMEM tile of packed inputs, streamed per step
    # w_ref: (d_eff, g) VMEM block-diagonal weight, resident (constant index_map)
    # o_ref: (tile_rows, g) VMEM output tile (lane-dense when g is widened)
    logits = jnp.dot(x_ref[...], w_ref[...], preferred_element_type=jnp.float32)
    o_ref[...] = jax.nn.sigmoid(logits + b_ref[0]).astype(o_ref.dtype)


def _round_up(x, m):
    return (x + m - 1) // m * m


def _cdiv(a, b):
    return (a + b - 1) // b


def logistic_regression_forward(x, weight, bias, *, tile_rows=None,
                                target_tile_bytes=12 * 1024 * 1024):
    """sigmoid(x @ weight.T + bias).

    x: (N, D) float; weight: (1, D) (PyTorch Linear layout); bias: (1,).
    Returns (N, 1) float32.
    """
    n, d = x.shape
    x = x.astype(jnp.float32)
    weight = weight.astype(jnp.float32).reshape(1, d)
    bias = jnp.asarray(bias, jnp.float32).reshape(-1)
    w_col = weight.reshape(d, 1)

    # ---- packing factor g: fold g rows of x into one (g*d)-wide packed row ----
    # g0 makes d_eff = g*d a multiple of 128 (lane-aligned, works for any d<128
    # via gcd); g is then widened (powers of two, multiples of g0) toward 128 so
    # the output block is lane-dense, as long as (a) the block-diag weight stays
    # <= ~2 MiB and (b) there are still >= 8 packed rows of real data.
    if d < 128 and n >= (128 // math.gcd(d, 128)):
        g = 128 // math.gcd(d, 128)
        while (2 * g <= 128
               and (2 * g) * (2 * g) * d * 4 <= 2 * 1024 * 1024
               and n // (2 * g) >= 8):
            g *= 2
    else:
        g = 1
    d_eff = g * d

    n_main = (n // g) * g          # rows handled by the kernel (packed)
    rem = n - n_main               # < g rows handled by a tiny jnp epilogue
    rows = n_main // g             # packed rows

    if g > 1:
        # W_big[j*d:(j+1)*d, j] = w  (block-diagonal columns); column j of the
        # matmul result recovers the logit of original row r*g + j.
        w_big = jnp.kron(jnp.eye(g, dtype=jnp.float32), w_col)      # (d_eff, g)
    else:
        w_big = w_col                                               # (d, 1)

    # Packing reshape: free bitcast when rem == 0; otherwise a prefix slice
    # (strictly cheaper than the old zeros+set full pad of x).
    x_main = x if rem == 0 else x[:n_main]
    x_packed = x_main.reshape(rows, d_eff)

    # ---- tile sizing ----
    if tile_rows is None:
        tile_rows = max(8, target_tile_bytes // (d_eff * 4))
    # keep >= ~4 grid steps when possible (balanced split across v7x's 2 TCs),
    # never tile past the end of the data, keep sublane (8) alignment.
    tile_rows = min(tile_rows, max(8, _cdiv(rows, 4)), max(rows, 1))
    tile_rows = max(8, _round_up(tile_rows, 8))

    grid = (_cdiv(rows, tile_rows),)   # ragged last tile is masked by Pallas

    # ---- VMEM budget derived from actual (double-buffered) footprint ----
    x_tile_vmem = tile_rows * _round_up(d_eff, 128) * 4
    out_tile_vmem = tile_rows * _round_up(g, 128) * 4
    w_vmem = _round_up(d_eff, 8) * _round_up(g, 128) * 4
    vmem_limit = 2 * (x_tile_vmem + out_tile_vmem) + w_vmem + (4 << 20)
    vmem_limit = int(max(vmem_limit, 8 << 20))

    cost = pl.CostEstimate(
        flops=int(2 * n_main * d),
        transcendentals=int(n_main),
        bytes_accessed=int(n_main * d * 4 + n_main * 4 + d_eff * g * 4 + 4),
    )

    out_main = pl.pallas_call(
        _logreg_kernel,
        out_shape=jax.ShapeDtypeStruct((rows, g), jnp.float32),
        grid=grid,
        in_specs=[
            pl.BlockSpec(memory_space=pltpu.SMEM),                # bias (scalar, resident)
            pl.BlockSpec((tile_rows, d_eff), lambda i: (i, 0)),   # x (streamed tiles)
            pl.BlockSpec((d_eff, g), lambda i: (0, 0)),           # weight (resident)
        ],
        out_specs=pl.BlockSpec((tile_rows, g), lambda i: (i, 0)),
        compiler_params=pltpu.CompilerParams(
            dimension_semantics=("parallel",),   # independent batch tiles
            vmem_limit_bytes=vmem_limit,
        ),
        cost_estimate=cost,
    )(bias, x_packed, w_big)

    out_main = out_main.reshape(n_main, 1)   # row-major flatten restores order

    if rem > 0:
        # Tiny epilogue (< g rows) computed in plain jnp instead of padding x.
        tail = jax.nn.sigmoid(x[n_main:] @ w_col + bias)
        return jnp.concatenate([out_main, tail], axis=0)
    return out_main


if __name__ == "__main__":
    key = jax.random.PRNGKey(0)
    kx, kw, kb = jax.random.split(key, 3)

    batch = 8
    input_dim = 32

    x = jax.random.normal(kx, (batch, input_dim), dtype=jnp.float32)
    # Deterministic init mimicking torch.nn.Linear (uniform in +-1/sqrt(fan_in)).
    bound = 1.0 / jnp.sqrt(jnp.float32(input_dim))
    weight = jax.random.uniform(
        kw, (1, input_dim), minval=-bound, maxval=bound, dtype=jnp.float32
    )
    bias = jax.random.uniform(
        kb, (1,), minval=-bound, maxval=bound, dtype=jnp.float32
    )

    out = jax.block_until_ready(logistic_regression_forward(x, weight, bias))
    ref = jax.nn.sigmoid(x @ weight.T + bias)
    assert out.shape == (batch, 1)
    assert jnp.allclose(out, ref, atol=1e-5, rtol=1e-5)

    # Multi-tile path (grid > 1) with widened packing + remainder epilogue.
    n2 = 300
    x2 = jax.random.normal(kx, (n2, input_dim), dtype=jnp.float32)
    out2 = jax.block_until_ready(
        logistic_regression_forward(x2, weight, bias, tile_rows=8)
    )
    ref2 = jax.nn.sigmoid(x2 @ weight.T + bias)
    assert out2.shape == (n2, 1)
    assert jnp.allclose(out2, ref2, atol=1e-5, rtol=1e-5)

    # Ragged last tile (masked edge block) + n % g remainder path.
    n4 = 37
    x4 = jax.random.normal(kx, (n4, input_dim), dtype=jnp.float32)
    out4 = jax.block_until_ready(logistic_regression_forward(x4, weight, bias))
    ref4 = jax.nn.sigmoid(x4 @ weight.T + bias)
    assert out4.shape == (n4, 1)
    assert jnp.allclose(out4, ref4, atol=1e-5, rtol=1e-5)

    # Non-packed path (D >= 128).
    d3, n3 = 200, 64
    x3 = jax.random.normal(kx, (n3, d3), dtype=jnp.float32)
    w3 = jax.random.uniform(kw, (1, d3), minval=-0.1, maxval=0.1, dtype=jnp.float32)
    out3 = jax.block_until_ready(logistic_regression_forward(x3, w3, bias))
    ref3 = jax.nn.sigmoid(x3 @ w3.T + bias)
    assert out3.shape == (n3, 1)
    assert jnp.allclose(out3, ref3, atol=1e-5, rtol=1e-5)

    print("KERNEL_OK")
</pallas_src>

<mosaic_0001>
module attributes {stable_mosaic.version = 11 : i64} {
  func.func @_logreg_kernel(%arg0: i32, %arg1: memref<1xf32, #tpu.memory_space<smem>>, %arg2: memref<8x128xf32, #tpu.memory_space<vmem>>, %arg3: memref<128x4xf32, #tpu.memory_space<vmem>>, %arg4: memref<8x4xf32, #tpu.memory_space<vmem>>) attributes {dimension_semantics = [#tpu.dimension_semantics<parallel>], iteration_bounds = array<i64: 1>, scalar_prefetch = 0 : i64, scratch_operands = 0 : i64, tpu.core_type = #tpu.core_type<tc>, window_params = [{transform_indices = @transform_0, window_bounds = array<i64: 1>}, {transform_indices = @transform_1, window_bounds = array<i64: 8, 128>}, {pipeline_mode = #tpu.pipeline_mode<synchronous>, transform_indices = @transform_2, window_bounds = array<i64: 128, 4>}, {transform_indices = @transform_3, window_bounds = array<i64: 8, 4>}]} {
    %c0 = arith.constant 0 : index
    %c0_0 = arith.constant 0 : index
    %0 = vector.load %arg2[%c0, %c0_0] : memref<8x128xf32, #tpu.memory_space<vmem>>, vector<8x128xf32>
    %c0_1 = arith.constant 0 : index
    %c0_2 = arith.constant 0 : index
    %1 = vector.load %arg3[%c0_1, %c0_2] : memref<128x4xf32, #tpu.memory_space<vmem>>, vector<128x4xf32>
    %cst = arith.constant dense<0.000000e+00> : vector<8x4xf32>
    %2 = tpu.matmul %0, %1, %cst {dimension_numbers = #tpu.dot_dimension_numbers<[1], [0], [0], [1], [0, 0, 1, 1], [], []>} : vector<8x128xf32>, vector<128x4xf32>, vector<8x4xf32> -> vector<8x4xf32>
    %c0_3 = arith.constant 0 : index
    %3 = memref.load %arg1[%c0_3] : memref<1xf32, #tpu.memory_space<smem>>
    %4 = vector.broadcast %3 : f32 to vector<8x4xf32>
    %5 = arith.addf %2, %4 : vector<8x4xf32>
    %6 = arith.negf %5 : vector<8x4xf32>
    %7 = math.exp %6 : vector<8x4xf32>
    %cst_4 = arith.constant 1.000000e+00 : f32
    %8 = vector.broadcast %cst_4 : f32 to vector<8x4xf32>
    %9 = arith.addf %8, %7 : vector<8x4xf32>
    %10 = arith.divf %8, %9 : vector<8x4xf32>
    %c0_5 = arith.constant 0 : index
    %c0_6 = arith.constant 0 : index
    %11 = vector.load %arg4[%c0_5, %c0_6] : memref<8x4xf32, #tpu.memory_space<vmem>>, vector<8x4xf32>
    tpu.vector_store %arg4[%c0_5, %c0_6], %10 {strides = array<i32>} : memref<8x4xf32, #tpu.memory_space<vmem>>, vector<8x4xf32>,
    return
  }
  func.func @transform_0(%arg0: i32) -> i32 {
    %c0_i32 = arith.constant 0 : i32
    %c0_i32_0 = arith.constant 0 : i32
    return %c0_i32 : i32
  }
  func.func @transform_1(%arg0: i32) -> (i32, i32) {
    %c0_i32 = arith.constant 0 : i32
    %c0_i32_0 = arith.constant 0 : i32
    return %arg0, %c0_i32 : i32, i32
  }
  func.func @transform_2(%arg0: i32) -> (i32, i32) {
    %c0_i32 = arith.constant 0 : i32
    %c0_i32_0 = arith.constant 0 : i32
    %c0_i32_1 = arith.constant 0 : i32
    return %c0_i32, %c0_i32_0 : i32, i32
  }
  func.func @transform_3(%arg0: i32) -> (i32, i32) {
    %c0_i32 = arith.constant 0 : i32
    %c0_i32_0 = arith.constant 0 : i32
    return %arg0, %c0_i32 : i32, i32
  }
}

</mosaic_0001>

<bundles_post_ra>
// kernel: tpu_custom_call.1
= control target key start
LH: loop header
LB: loop body
LE: loop exit
PB: predicated region body
PF: predicated region fallthrough
CT: control target
= control target key end

     0   :  { %9 = vsyncpa [#allocation4], 0  ;;  %v213_v1 = vmov 0.0   ;;  %vm214_vm0 = vmmov 0   ;;  %vm111_vm1 = vcmask 31744   ;;  %s295_s0 = inlined_call_operand.<no memory space> [shape: f32[1], index: 0, kind: input, shape index: {}]   ;;  %s296_s1 = inlined_call_operand.vmem [shape: f32[2,128], index: 1, kind: input, shape index: {}]   ;;  %s297_s2 = inlined_call_operand.vmem [shape: f32[128,4], index: 2, kind: input, shape index: {}]   ;;  %s298_s3 = inlined_call_operand.hbm [shape: f32[2,4], index: 3, kind: output, shape index: {}]  }
   0x1   :  { %v32_v0 = vld [vmem:[%s297_s2 + $0x78] sm:$0xff]  ;;  %147 = vmatprep.subr.mxu0 %v213_v1  ;;  %v31_v2 = vld [vmem:[%s297_s2 + $0x70] sm:$0xff]  ;;  %179 = vmatprep.mubr.msk.f32.mxu0 %vm214_vm0, %v213_v1  ;;  %v30_v3 = vld [vmem:[%s297_s2 + $0x68] sm:$0xff]  ;;  %v34_v18 = vstv %s295_s0 }
   0x2   :  { %148 = vmatpush3.msra.mxu0 %v32_v0  ;;  %v29_v4 = vld [vmem:[%s297_s2 + $0x60] sm:$0xff]  ;;  %v28_v5 = vld [vmem:[%s297_s2 + $0x58] sm:$0xff]  ;;  %v27_v6 = vld [vmem:[%s297_s2 + $0x50] sm:$0xff] }
   0x3   :  { %149 = vmatprep.subr.mxu0 %v213_v1  ;;  %v26_v7 = vld [vmem:[%s297_s2 + $0x48] sm:$0xff]  ;;  %v25_v8 = vld [vmem:[%s297_s2 + $0x40] sm:$0xff]  ;;  %v24_v9 = vld [vmem:[%s297_s2 + $0x38] sm:$0xff] }
   0x4   :  { %150 = vmatpush3.msra.mxu0 %v31_v2  ;;  %v23_v10 = vld [vmem:[%s297_s2 + $0x30] sm:$0xff]  ;;  %v22_v11 = vld [vmem:[%s297_s2 + $0x28] sm:$0xff]  ;;  %v21_v12 = vld [vmem:[%s297_s2 + $0x20] sm:$0xff] }
   0x5   :  { %151 = vmatprep.subr.mxu0 %v213_v1  ;;  %v20_v13 = vld [vmem:[%s297_s2 + $0x18] sm:$0xff]  ;;  %v19_v14 = vld [vmem:[%s297_s2 + $0x10] sm:$0xff]  ;;  %v18_v15 = vld [vmem:[%s297_s2 + $0x8] sm:$0xff] }
   0x6   :  { %152 = vmatpush3.msra.mxu0 %v30_v3  ;;  %v17_v16 = vld [vmem:[%s297_s2] sm:$0xff] }
   0x7   :  { %153 = vmatprep.subr.mxu0 %v213_v1  ;;  %v16_v17 = vld [vmem:[%s296_s1] sm:$0xff] }
   0x8   :  { %154 = vmatpush3.msra.mxu0 %v29_v4 }
   0x9   :  { %155 = vmatprep.subr.mxu0 %v213_v1 }
   0xa   :  { %156 = vmatpush3.msra.mxu0 %v28_v5 }
   0xb   :  { %157 = vmatprep.subr.mxu0 %v213_v1 }
   0xc   :  { %158 = vmatpush3.msra.mxu0 %v27_v6 }
   0xd   :  { %159 = vmatprep.subr.mxu0 %v213_v1 }
   0xe   :  { %160 = vmatpush3.msra.mxu0 %v26_v7 }
   0xf   :  { %161 = vmatprep.subr.mxu0 %v213_v1 }
  0x10   :  { %162 = vmatpush3.msra.mxu0 %v25_v8 }
  0x11   :  { %163 = vmatprep.subr.mxu0 %v213_v1 }
  0x12   :  { %164 = vmatpush3.msra.mxu0 %v24_v9 }
  0x13   :  { %165 = vmatprep.subr.mxu0 %v213_v1 }
  0x14   :  { %166 = vmatpush3.msra.mxu0 %v23_v10 }
  0x15   :  { %167 = vmatprep.subr.mxu0 %v213_v1 }
  0x16   :  { %168 = vmatpush3.msra.mxu0 %v22_v11 }
  0x17   :  { %169 = vmatprep.subr.mxu0 %v213_v1 }
  0x18   :  { %170 = vmatpush3.msra.mxu0 %v21_v12 }
  0x19   :  { %171 = vmatprep.subr.mxu0 %v213_v1 }
  0x1a   :  { %172 = vmatpush3.msra.mxu0 %v20_v13 }
  0x1b   :  { %173 = vmatprep.subr.mxu0 %v213_v1 }
  0x1c   :  { %174 = vmatpush3.msra.mxu0 %v19_v14 }
  0x1d   :  { %175 = vmatprep.subr.mxu0 %v213_v1 }
  0x1e   :  { %176 = vmatpush3.msra.mxu0 %v18_v15 }
  0x1f   :  { %177 = vmatprep.subr.mxu0 %v213_v1 }
  0x20   :  { %178 = vmatpush3.msra.mxu0 %v17_v16 }
  0x21   :  { %180 = vmatmul.mubr.f32.vlgmr.msra.gmra.mxu0 %v16_v17 }
  0xe1   :  { %v101_v19 = vpop.f32.mrf.mxu0 }
  0xe2   :  { %v102_v20 = vadd.f32 %v101_v19, %v34_v18 }
  0xe3   :  { %v181_v21 = vpop.f32.mrf.mxu0 }
  0xe4   :  { %v129_v22 = vmul.f32 -1.442695, %v102_v20 }
  0xe6   :  { %187 = vpow2.f32 %v129_v22 }
  0xf3   :  { %v188_v23 = vpop.eup %187 }
  0xf4   :  { %v108_v24 = vadd.f32 1.0, %v188_v23 }
  0xf6   :  { %189 = vrcp.f32 %v108_v24 }
 0x103   :  { %v190_v25 = vpop.eup %189 }
 0x104   :  { %112 = vst.msk [vmem:[#allocation3] sm:$0xff] %vm111_vm1, %v190_v25 }
 0x105   :  { %117 = vsyncadd [#allocation4], 96  ;;  %s215_s1 = smov [#allocation3]  }
 0x106   :  { %s118_s2 = sshll.u32 %s215_s1, 4  ;;  %s119_s2 = int_to_ptr.vmem [resolvable:$true] %s118_s2 }
 0x107   :  { %s191_s21 = scalar_lea.vmem %s119_s2, 32  ;;  %s195_s22 = scalar_lea.vmem %s119_s2, 128 }
 0x108   :  { %p192_p0 = scmp.ne.s32.totalorder %s119_s2, %s191_s21  ;;  %p196_p1 = scmp.lt.s32.totalorder %s119_s2, %s119_s2 }
 0x109   :  { %p197_p2 = scmp.lt.s32.totalorder %s195_s22, %s191_s21 }
 0x10b   :  { %p198_p3 = por %p197_p2, %p196_p1 }
 0x10d   :  { %p199_p4 = pnand %p198_p3, %p192_p0 }
 0x10f   :  { %202 = shalt.err (!%p199_p4)
}
 0x110   :  { %s216_s0 = smov 32   ;;  %s217_s23 = smov 2  }
 0x111   :  { %124 = dma.vmem_to_hbm [thread:$0]  %s119_s2, 32, %s298_s3, [#allocation4], %s216_s0, %s216_s0, %s217_s23  }
 0x112   :  { %211 = dma.done.wait [#allocation4], 128  }
 0x113   :  { %212 = vsyncadd [#allocation4], 4294967168 }
 0x114   :  { %128 = vsyncpa [#allocation4], 1 }

</bundles_post_ra>
